<compile_context>
chip_gen: v5e
topology: v5e:2x2
jax: 0.10.0
libtpu: 0.0.40
codegen_flags: <defaults>
</compile_context>

<pallas_src>
import functools

import jax
import jax.numpy as jnp
from jax.experimental import pallas as pl
from jax.experimental.pallas import tpu as pltpu


def _pointwise_conv_kernel(x_ref, w_ref, b_ref, o_ref, *, c_in, c_out):
    """One (batch, spatial-tile) block of the 1x1x1 conv.

    x_ref: (1, C_in,  tr, 128)  VMEM   (spatial tile, lane-dense)
    w_ref: (C_out, C_in)        SMEM   (scalar reads)
    b_ref: (C_out,)             SMEM
    o_ref: (1, C_out, tr, 128)  VMEM
    """
    tile_shape = o_ref.shape[2:]  # (tr, 128)

    # Init accumulators with the bias (scalar broadcast from SMEM).
    accs = [jnp.full(tile_shape, b_ref[o], dtype=jnp.float32) for o in range(c_out)]

    # Unrolled VPU multiply-accumulate over input channels; each x_ref[0, c] is a
    # dense (tr, 128) slab so the VALU work has no sublane/lane padding waste.
    for c in range(c_in):
        xc = x_ref[0, c].astype(jnp.float32)
        for o in range(c_out):
            accs[o] = accs[o] + w_ref[o, c] * xc

    for o in range(c_out):
        o_ref[0, o] = accs[o].astype(o_ref.dtype)


def pointwise_conv3d_ncdhw(x, weight, bias, *, block_rows=512):
    """1x1x1 Conv3d (channel mix) in NCDHW layout via Pallas.

    x:      (N, C_in, D, H, W) f32
    weight: (C_out, C_in)      f32   (Conv3d weight with the 1x1x1 dims squeezed)
    bias:   (C_out,)           f32
    returns (N, C_out, D, H, W) f32
    """
    N, C_in, D, H, W = x.shape
    C_out = weight.shape[0]
    S = D * H * W
    LANES = 128

    # Spatial goes on (sublane, lane): view (N, C, S) as (N, C, S128, 128).
    s128 = pl.cdiv(S, LANES)
    if s128 <= block_rows:
        tr = s128                      # single spatial tile: block spans full axis
        s128_pad = s128
    else:
        tr = block_rows                # multiple of 8 -> satisfies (8, 128) tiling
        s128_pad = pl.cdiv(s128, tr) * tr
    s_pad = s128_pad * LANES

    x_flat = x.reshape(N, C_in, S)
    if s_pad != S:
        x_flat = jnp.pad(x_flat, ((0, 0), (0, 0), (0, s_pad - S)))
    x4 = x_flat.reshape(N, C_in, s128_pad, LANES)

    grid = (N, s128_pad // tr)

    kernel = functools.partial(_pointwise_conv_kernel, c_in=C_in, c_out=C_out)

    cost = pl.CostEstimate(
        flops=2 * N * S * C_in * C_out,
        transcendentals=0,
        bytes_accessed=4 * (N * S * (C_in + C_out) + C_in * C_out + C_out),
    )

    out4 = pl.pallas_call(
        kernel,
        out_shape=jax.ShapeDtypeStruct((N, C_out, s128_pad, LANES), x.dtype),
        grid_spec=pltpu.PrefetchScalarGridSpec(
            num_scalar_prefetch=0,
            grid=grid,
            in_specs=[
                # Large lane-dense spatial tile, all input channels per block.
                pl.BlockSpec((1, C_in, tr, LANES), lambda n, s: (n, 0, s, 0)),
                # Tiny weight/bias stay resident in SMEM (no per-step VMEM DMA).
                pl.BlockSpec(memory_space=pltpu.MemorySpace.SMEM),
                pl.BlockSpec(memory_space=pltpu.MemorySpace.SMEM),
            ],
            out_specs=pl.BlockSpec((1, C_out, tr, LANES), lambda n, s: (n, 0, s, 0)),
        ),
        compiler_params=pltpu.CompilerParams(
            dimension_semantics=("parallel", "parallel"),
        ),
        cost_estimate=cost,
    )(x4, weight, bias)

    out = out4.reshape(N, C_out, s_pad)[:, :, :S].reshape(N, C_out, D, H, W)
    return out


def outconv_g_forward(x, weight, bias):
    """Forward of OutconvG (the LocTop head): nn.Conv3d(in_ch, out_ch, 1)."""
    return pointwise_conv3d_ncdhw(x, weight, bias)


if __name__ == "__main__":
    key = jax.random.PRNGKey(0)
    k_x, k_w, k_b = jax.random.split(key, 3)

    # Small shapes consistent with GlobalImageEncoder's LocTop: in_ch = Base*4
    # (Base=4 -> 16), out_ch = n_classes (3), on a downsampled feature map.
    N, C_in, C_out, D, H, W = 2, 16, 3, 4, 8, 8

    x = jax.random.normal(k_x, (N, C_in, D, H, W), dtype=jnp.float32)
    # Conv3d 1x1x1 weight is (C_out, C_in, 1, 1, 1); we keep the squeezed form.
    weight = jax.random.normal(k_w, (C_out, C_in), dtype=jnp.float32) * 0.1
    bias = jax.random.normal(k_b, (C_out,), dtype=jnp.float32) * 0.1

    out = outconv_g_forward(x, weight, bias)
    out = jax.block_until_ready(out)

    # Reference check in plain JAX (same math as nn.Conv3d with kernel_size=1).
    ref = jnp.einsum("ncdhw,oc->nodhw", x, weight) + bias[None, :, None, None, None]
    assert out.shape == (N, C_out, D, H, W)
    assert jnp.allclose(out, ref, atol=1e-5, rtol=1e-5)

    print("KERNEL_OK")
</pallas_src>

<mosaic_0001>
module attributes {stable_mosaic.version = 11 : i64} {
  func.func @_pointwise_conv_kernel(%arg0: i32, %arg1: i32, %arg2: memref<1x16x2x128xf32, #tpu.memory_space<vmem>>, %arg3: memref<3x16xf32, #tpu.memory_space<smem>>, %arg4: memref<3xf32, #tpu.memory_space<smem>>, %arg5: memref<1x3x2x128xf32, #tpu.memory_space<vmem>>) attributes {dimension_semantics = [#tpu.dimension_semantics<parallel>, #tpu.dimension_semantics<parallel>], iteration_bounds = array<i64: 2, 1>, scalar_prefetch = 0 : i64, scratch_operands = 0 : i64, tpu.core_type = #tpu.core_type<tc>, window_params = [{transform_indices = @transform_0, window_bounds = array<i64: 1, 16, 2, 128>}, {transform_indices = @transform_1, window_bounds = array<i64: 3, 16>}, {transform_indices = @transform_2, window_bounds = array<i64: 3>}, {transform_indices = @transform_3, window_bounds = array<i64: 1, 3, 2, 128>}]} {
    %c0 = arith.constant 0 : index
    %0 = memref.load %arg4[%c0] : memref<3xf32, #tpu.memory_space<smem>>
    %1 = vector.broadcast %0 : f32 to vector<2x128xf32>
    %c1 = arith.constant 1 : index
    %2 = memref.load %arg4[%c1] : memref<3xf32, #tpu.memory_space<smem>>
    %3 = vector.broadcast %2 : f32 to vector<2x128xf32>
    %c2 = arith.constant 2 : index
    %4 = memref.load %arg4[%c2] : memref<3xf32, #tpu.memory_space<smem>>
    %5 = vector.broadcast %4 : f32 to vector<2x128xf32>
    %c0_0 = arith.constant 0 : index
    %c0_1 = arith.constant 0 : index
    %c0_2 = arith.constant 0 : index
    %c0_3 = arith.constant 0 : index
    %6 = vector.load %arg2[%c0_0, %c0_1, %c0_2, %c0_3] : memref<1x16x2x128xf32, #tpu.memory_space<vmem>>, vector<1x1x2x128xf32>
    %7 = vector.shape_cast %6 : vector<1x1x2x128xf32> to vector<2x128xf32>
    %c0_4 = arith.constant 0 : index
    %c0_5 = arith.constant 0 : index
    %8 = memref.load %arg3[%c0_4, %c0_5] : memref<3x16xf32, #tpu.memory_space<smem>>
    %9 = vector.broadcast %8 : f32 to vector<2x128xf32>
    %10 = arith.mulf %9, %7 : vector<2x128xf32>
    %11 = arith.addf %1, %10 : vector<2x128xf32>
    %c1_6 = arith.constant 1 : index
    %c0_7 = arith.constant 0 : index
    %12 = memref.load %arg3[%c1_6, %c0_7] : memref<3x16xf32, #tpu.memory_space<smem>>
    %13 = vector.broadcast %12 : f32 to vector<2x128xf32>
    %14 = arith.mulf %13, %7 : vector<2x128xf32>
    %15 = arith.addf %3, %14 : vector<2x128xf32>
    %c2_8 = arith.constant 2 : index
    %c0_9 = arith.constant 0 : index
    %16 = memref.load %arg3[%c2_8, %c0_9] : memref<3x16xf32, #tpu.memory_space<smem>>
    %17 = vector.broadcast %16 : f32 to vector<2x128xf32>
    %18 = arith.mulf %17, %7 : vector<2x128xf32>
    %19 = arith.addf %5, %18 : vector<2x128xf32>
    %c0_10 = arith.constant 0 : index
    %c1_11 = arith.constant 1 : index
    %c0_12 = arith.constant 0 : index
    %c0_13 = arith.constant 0 : index
    %20 = vector.load %arg2[%c0_10, %c1_11, %c0_12, %c0_13] : memref<1x16x2x128xf32, #tpu.memory_space<vmem>>, vector<1x1x2x128xf32>
    %21 = vector.shape_cast %20 : vector<1x1x2x128xf32> to vector<2x128xf32>
    %c0_14 = arith.constant 0 : index
    %c1_15 = arith.constant 1 : index
    %22 = memref.load %arg3[%c0_14, %c1_15] : memref<3x16xf32, #tpu.memory_space<smem>>
    %23 = vector.broadcast %22 : f32 to vector<2x128xf32>
    %24 = arith.mulf %23, %21 : vector<2x128xf32>
    %25 = arith.addf %11, %24 : vector<2x128xf32>
    %c1_16 = arith.constant 1 : index
    %c1_17 = arith.constant 1 : index
    %26 = memref.load %arg3[%c1_16, %c1_17] : memref<3x16xf32, #tpu.memory_space<smem>>
    %27 = vector.broadcast %26 : f32 to vector<2x128xf32>
    %28 = arith.mulf %27, %21 : vector<2x128xf32>
    %29 = arith.addf %15, %28 : vector<2x128xf32>
    %c2_18 = arith.constant 2 : index
    %c1_19 = arith.constant 1 : index
    %30 = memref.load %arg3[%c2_18, %c1_19] : memref<3x16xf32, #tpu.memory_space<smem>>
    %31 = vector.broadcast %30 : f32 to vector<2x128xf32>
    %32 = arith.mulf %31, %21 : vector<2x128xf32>
    %33 = arith.addf %19, %32 : vector<2x128xf32>
    %c0_20 = arith.constant 0 : index
    %c2_21 = arith.constant 2 : index
    %c0_22 = arith.constant 0 : index
    %c0_23 = arith.constant 0 : index
    %34 = vector.load %arg2[%c0_20, %c2_21, %c0_22, %c0_23] : memref<1x16x2x128xf32, #tpu.memory_space<vmem>>, vector<1x1x2x128xf32>
    %35 = vector.shape_cast %34 : vector<1x1x2x128xf32> to vector<2x128xf32>
    %c0_24 = arith.constant 0 : index
    %c2_25 = arith.constant 2 : index
    %36 = memref.load %arg3[%c0_24, %c2_25] : memref<3x16xf32, #tpu.memory_space<smem>>
    %37 = vector.broadcast %36 : f32 to vector<2x128xf32>
    %38 = arith.mulf %37, %35 : vector<2x128xf32>
    %39 = arith.addf %25, %38 : vector<2x128xf32>
    %c1_26 = arith.constant 1 : index
    %c2_27 = arith.constant 2 : index
    %40 = memref.load %arg3[%c1_26, %c2_27] : memref<3x16xf32, #tpu.memory_space<smem>>
    %41 = vector.broadcast %40 : f32 to vector<2x128xf32>
    %42 = arith.mulf %41, %35 : vector<2x128xf32>
    %43 = arith.addf %29, %42 : vector<2x128xf32>
    %c2_28 = arith.constant 2 : index
    %c2_29 = arith.constant 2 : index
    %44 = memref.load %arg3[%c2_28, %c2_29] : memref<3x16xf32, #tpu.memory_space<smem>>
    %45 = vector.broadcast %44 : f32 to vector<2x128xf32>
    %46 = arith.mulf %45, %35 : vector<2x128xf32>
    %47 = arith.addf %33, %46 : vector<2x128xf32>
    %c0_30 = arith.constant 0 : index
    %c3 = arith.constant 3 : index
    %c0_31 = arith.constant 0 : index
    %c0_32 = arith.constant 0 : index
    %48 = vector.load %arg2[%c0_30, %c3, %c0_31, %c0_32] : memref<1x16x2x128xf32, #tpu.memory_space<vmem>>, vector<1x1x2x128xf32>
    %49 = vector.shape_cast %48 : vector<1x1x2x128xf32> to vector<2x128xf32>
    %c0_33 = arith.constant 0 : index
    %c3_34 = arith.constant 3 : index
    %50 = memref.load %arg3[%c0_33, %c3_34] : memref<3x16xf32, #tpu.memory_space<smem>>
    %51 = vector.broadcast %50 : f32 to vector<2x128xf32>
    %52 = arith.mulf %51, %49 : vector<2x128xf32>
    %53 = arith.addf %39, %52 : vector<2x128xf32>
    %c1_35 = arith.constant 1 : index
    %c3_36 = arith.constant 3 : index
    %54 = memref.load %arg3[%c1_35, %c3_36] : memref<3x16xf32, #tpu.memory_space<smem>>
    %55 = vector.broadcast %54 : f32 to vector<2x128xf32>
    %56 = arith.mulf %55, %49 : vector<2x128xf32>
    %57 = arith.addf %43, %56 : vector<2x128xf32>
    %c2_37 = arith.constant 2 : index
    %c3_38 = arith.constant 3 : index
    %58 = memref.load %arg3[%c2_37, %c3_38] : memref<3x16xf32, #tpu.memory_space<smem>>
    %59 = vector.broadcast %58 : f32 to vector<2x128xf32>
    %60 = arith.mulf %59, %49 : vector<2x128xf32>
    %61 = arith.addf %47, %60 : vector<2x128xf32>
    %c0_39 = arith.constant 0 : index
    %c4 = arith.constant 4 : index
    %c0_40 = arith.constant 0 : index
    %c0_41 = arith.constant 0 : index
    %62 = vector.load %arg2[%c0_39, %c4, %c0_40, %c0_41] : memref<1x16x2x128xf32, #tpu.memory_space<vmem>>, vector<1x1x2x128xf32>
    %63 = vector.shape_cast %62 : vector<1x1x2x128xf32> to vector<2x128xf32>
    %c0_42 = arith.constant 0 : index
    %c4_43 = arith.constant 4 : index
    %64 = memref.load %arg3[%c0_42, %c4_43] : memref<3x16xf32, #tpu.memory_space<smem>>
    %65 = vector.broadcast %64 : f32 to vector<2x128xf32>
    %66 = arith.mulf %65, %63 : vector<2x128xf32>
    %67 = arith.addf %53, %66 : vector<2x128xf32>
    %c1_44 = arith.constant 1 : index
    %c4_45 = arith.constant 4 : index
    %68 = memref.load %arg3[%c1_44, %c4_45] : memref<3x16xf32, #tpu.memory_space<smem>>
    %69 = vector.broadcast %68 : f32 to vector<2x128xf32>
    %70 = arith.mulf %69, %63 : vector<2x128xf32>
    %71 = arith.addf %57, %70 : vector<2x128xf32>
    %c2_46 = arith.constant 2 : index
    %c4_47 = arith.constant 4 : index
    %72 = memref.load %arg3[%c2_46, %c4_47] : memref<3x16xf32, #tpu.memory_space<smem>>
    %73 = vector.broadcast %72 : f32 to vector<2x128xf32>
    %74 = arith.mulf %73, %63 : vector<2x128xf32>
    %75 = arith.addf %61, %74 : vector<2x128xf32>
    %c0_48 = arith.constant 0 : index
    %c5 = arith.constant 5 : index
    %c0_49 = arith.constant 0 : index
    %c0_50 = arith.constant 0 : index
    %76 = vector.load %arg2[%c0_48, %c5, %c0_49, %c0_50] : memref<1x16x2x128xf32, #tpu.memory_space<vmem>>, vector<1x1x2x128xf32>
    %77 = vector.shape_cast %76 : vector<1x1x2x128xf32> to vector<2x128xf32>
    %c0_51 = arith.constant 0 : index
    %c5_52 = arith.constant 5 : index
    %78 = memref.load %arg3[%c0_51, %c5_52] : memref<3x16xf32, #tpu.memory_space<smem>>
    %79 = vector.broadcast %78 : f32 to vector<2x128xf32>
    %80 = arith.mulf %79, %77 : vector<2x128xf32>
    %81 = arith.addf %67, %80 : vector<2x128xf32>
    %c1_53 = arith.constant 1 : index
    %c5_54 = arith.constant 5 : index
    %82 = memref.load %arg3[%c1_53, %c5_54] : memref<3x16xf32, #tpu.memory_space<smem>>
    %83 = vector.broadcast %82 : f32 to vector<2x128xf32>
    %84 = arith.mulf %83, %77 : vector<2x128xf32>
    %85 = arith.addf %71, %84 : vector<2x128xf32>
    %c2_55 = arith.constant 2 : index
    %c5_56 = arith.constant 5 : index
    %86 = memref.load %arg3[%c2_55, %c5_56] : memref<3x16xf32, #tpu.memory_space<smem>>
    %87 = vector.broadcast %86 : f32 to vector<2x128xf32>
    %88 = arith.mulf %87, %77 : vector<2x128xf32>
    %89 = arith.addf %75, %88 : vector<2x128xf32>
    %c0_57 = arith.constant 0 : index
    %c6 = arith.constant 6 : index
    %c0_58 = arith.constant 0 : index
    %c0_59 = arith.constant 0 : index
    %90 = vector.load %arg2[%c0_57, %c6, %c0_58, %c0_59] : memref<1x16x2x128xf32, #tpu.memory_space<vmem>>, vector<1x1x2x128xf32>
    %91 = vector.shape_cast %90 : vector<1x1x2x128xf32> to vector<2x128xf32>
    %c0_60 = arith.constant 0 : index
    %c6_61 = arith.constant 6 : index
    %92 = memref.load %arg3[%c0_60, %c6_61] : memref<3x16xf32, #tpu.memory_space<smem>>
    %93 = vector.broadcast %92 : f32 to vector<2x128xf32>
    %94 = arith.mulf %93, %91 : vector<2x128xf32>
    %95 = arith.addf %81, %94 : vector<2x128xf32>
    %c1_62 = arith.constant 1 : index
    %c6_63 = arith.constant 6 : index
    %96 = memref.load %arg3[%c1_62, %c6_63] : memref<3x16xf32, #tpu.memory_space<smem>>
    %97 = vector.broadcast %96 : f32 to vector<2x128xf32>
    %98 = arith.mulf %97, %91 : vector<2x128xf32>
    %99 = arith.addf %85, %98 : vector<2x128xf32>
    %c2_64 = arith.constant 2 : index
    %c6_65 = arith.constant 6 : index
    %100 = memref.load %arg3[%c2_64, %c6_65] : memref<3x16xf32, #tpu.memory_space<smem>>
    %101 = vector.broadcast %100 : f32 to vector<2x128xf32>
    %102 = arith.mulf %101, %91 : vector<2x128xf32>
    %103 = arith.addf %89, %102 : vector<2x128xf32>
    %c0_66 = arith.constant 0 : index
    %c7 = arith.constant 7 : index
    %c0_67 = arith.constant 0 : index
    %c0_68 = arith.constant 0 : index
    %104 = vector.load %arg2[%c0_66, %c7, %c0_67, %c0_68] : memref<1x16x2x128xf32, #tpu.memory_space<vmem>>, vector<1x1x2x128xf32>
    %105 = vector.shape_cast %104 : vector<1x1x2x128xf32> to vector<2x128xf32>
    %c0_69 = arith.constant 0 : index
    %c7_70 = arith.constant 7 : index
    %106 = memref.load %arg3[%c0_69, %c7_70] : memref<3x16xf32, #tpu.memory_space<smem>>
    %107 = vector.broadcast %106 : f32 to vector<2x128xf32>
    %108 = arith.mulf %107, %105 : vector<2x128xf32>
    %109 = arith.addf %95, %108 : vector<2x128xf32>
    %c1_71 = arith.constant 1 : index
    %c7_72 = arith.constant 7 : index
    %110 = memref.load %arg3[%c1_71, %c7_72] : memref<3x16xf32, #tpu.memory_space<smem>>
    %111 = vector.broadcast %110 : f32 to vector<2x128xf32>
    %112 = arith.mulf %111, %105 : vector<2x128xf32>
    %113 = arith.addf %99, %112 : vector<2x128xf32>
    %c2_73 = arith.constant 2 : index
    %c7_74 = arith.constant 7 : index
    %114 = memref.load %arg3[%c2_73, %c7_74] : memref<3x16xf32, #tpu.memory_space<smem>>
    %115 = vector.broadcast %114 : f32 to vector<2x128xf32>
    %116 = arith.mulf %115, %105 : vector<2x128xf32>
    %117 = arith.addf %103, %116 : vector<2x128xf32>
    %c0_75 = arith.constant 0 : index
    %c8 = arith.constant 8 : index
    %c0_76 = arith.constant 0 : index
    %c0_77 = arith.constant 0 : index
    %118 = vector.load %arg2[%c0_75, %c8, %c0_76, %c0_77] : memref<1x16x2x128xf32, #tpu.memory_space<vmem>>, vector<1x1x2x128xf32>
    %119 = vector.shape_cast %118 : vector<1x1x2x128xf32> to vector<2x128xf32>
    %c0_78 = arith.constant 0 : index
    %c8_79 = arith.constant 8 : index
    %120 = memref.load %arg3[%c0_78, %c8_79] : memref<3x16xf32, #tpu.memory_space<smem>>
    %121 = vector.broadcast %120 : f32 to vector<2x128xf32>
    %122 = arith.mulf %121, %119 : vector<2x128xf32>
    %123 = arith.addf %109, %122 : vector<2x128xf32>
    %c1_80 = arith.constant 1 : index
    %c8_81 = arith.constant 8 : index
    %124 = memref.load %arg3[%c1_80, %c8_81] : memref<3x16xf32, #tpu.memory_space<smem>>
    %125 = vector.broadcast %124 : f32 to vector<2x128xf32>
    %126 = arith.mulf %125, %119 : vector<2x128xf32>
    %127 = arith.addf %113, %126 : vector<2x128xf32>
    %c2_82 = arith.constant 2 : index
    %c8_83 = arith.constant 8 : index
    %128 = memref.load %arg3[%c2_82, %c8_83] : memref<3x16xf32, #tpu.memory_space<smem>>
    %129 = vector.broadcast %128 : f32 to vector<2x128xf32>
    %130 = arith.mulf %129, %119 : vector<2x128xf32>
    %131 = arith.addf %117, %130 : vector<2x128xf32>
    %c0_84 = arith.constant 0 : index
    %c9 = arith.constant 9 : index
    %c0_85 = arith.constant 0 : index
    %c0_86 = arith.constant 0 : index
    %132 = vector.load %arg2[%c0_84, %c9, %c0_85, %c0_86] : memref<1x16x2x128xf32, #tpu.memory_space<vmem>>, vector<1x1x2x128xf32>
    %133 = vector.shape_cast %132 : vector<1x1x2x128xf32> to vector<2x128xf32>
    %c0_87 = arith.constant 0 : index
    %c9_88 = arith.constant 9 : index
    %134 = memref.load %arg3[%c0_87, %c9_88] : memref<3x16xf32, #tpu.memory_space<smem>>
    %135 = vector.broadcast %134 : f32 to vector<2x128xf32>
    %136 = arith.mulf %135, %133 : vector<2x128xf32>
    %137 = arith.addf %123, %136 : vector<2x128xf32>
    %c1_89 = arith.constant 1 : index
    %c9_90 = arith.constant 9 : index
    %138 = memref.load %arg3[%c1_89, %c9_90] : memref<3x16xf32, #tpu.memory_space<smem>>
    %139 = vector.broadcast %138 : f32 to vector<2x128xf32>
    %140 = arith.mulf %139, %133 : vector<2x128xf32>
    %141 = arith.addf %127, %140 : vector<2x128xf32>
    %c2_91 = arith.constant 2 : index
    %c9_92 = arith.constant 9 : index
    %142 = memref.load %arg3[%c2_91, %c9_92] : memref<3x16xf32, #tpu.memory_space<smem>>
    %143 = vector.broadcast %142 : f32 to vector<2x128xf32>
    %144 = arith.mulf %143, %133 : vector<2x128xf32>
    %145 = arith.addf %131, %144 : vector<2x128xf32>
    %c0_93 = arith.constant 0 : index
    %c10 = arith.constant 10 : index
    %c0_94 = arith.constant 0 : index
    %c0_95 = arith.constant 0 : index
    %146 = vector.load %arg2[%c0_93, %c10, %c0_94, %c0_95] : memref<1x16x2x128xf32, #tpu.memory_space<vmem>>, vector<1x1x2x128xf32>
    %147 = vector.shape_cast %146 : vector<1x1x2x128xf32> to vector<2x128xf32>
    %c0_96 = arith.constant 0 : index
    %c10_97 = arith.constant 10 : index
    %148 = memref.load %arg3[%c0_96, %c10_97] : memref<3x16xf32, #tpu.memory_space<smem>>
    %149 = vector.broadcast %148 : f32 to vector<2x128xf32>
    %150 = arith.mulf %149, %147 : vector<2x128xf32>
    %151 = arith.addf %137, %150 : vector<2x128xf32>
    %c1_98 = arith.constant 1 : index
    %c10_99 = arith.constant 10 : index
    %152 = memref.load %arg3[%c1_98, %c10_99] : memref<3x16xf32, #tpu.memory_space<smem>>
    %153 = vector.broadcast %152 : f32 to vector<2x128xf32>
    %154 = arith.mulf %153, %147 : vector<2x128xf32>
    %155 = arith.addf %141, %154 : vector<2x128xf32>
    %c2_100 = arith.constant 2 : index
    %c10_101 = arith.constant 10 : index
    %156 = memref.load %arg3[%c2_100, %c10_101] : memref<3x16xf32, #tpu.memory_space<smem>>
    %157 = vector.broadcast %156 : f32 to vector<2x128xf32>
    %158 = arith.mulf %157, %147 : vector<2x128xf32>
    %159 = arith.addf %145, %158 : vector<2x128xf32>
    %c0_102 = arith.constant 0 : index
    %c11 = arith.constant 11 : index
    %c0_103 = arith.constant 0 : index
    %c0_104 = arith.constant 0 : index
    %160 = vector.load %arg2[%c0_102, %c11, %c0_103, %c0_104] : memref<1x16x2x128xf32, #tpu.memory_space<vmem>>, vector<1x1x2x128xf32>
    %161 = vector.shape_cast %160 : vector<1x1x2x128xf32> to vector<2x128xf32>
    %c0_105 = arith.constant 0 : index
    %c11_106 = arith.constant 11 : index
    %162 = memref.load %arg3[%c0_105, %c11_106] : memref<3x16xf32, #tpu.memory_space<smem>>
    %163 = vector.broadcast %162 : f32 to vector<2x128xf32>
    %164 = arith.mulf %163, %161 : vector<2x128xf32>
    %165 = arith.addf %151, %164 : vector<2x128xf32>
    %c1_107 = arith.constant 1 : index
    %c11_108 = arith.constant 11 : index
    %166 = memref.load %arg3[%c1_107, %c11_108] : memref<3x16xf32, #tpu.memory_space<smem>>
    %167 = vector.broadcast %166 : f32 to vector<2x128xf32>
    %168 = arith.mulf %167, %161 : vector<2x128xf32>
    %169 = arith.addf %155, %168 : vector<2x128xf32>
    %c2_109 = arith.constant 2 : index
    %c11_110 = arith.constant 11 : index
    %170 = memref.load %arg3[%c2_109, %c11_110] : memref<3x16xf32, #tpu.memory_space<smem>>
    %171 = vector.broadcast %170 : f32 to vector<2x128xf32>
    %172 = arith.mulf %171, %161 : vector<2x128xf32>
    %173 = arith.addf %159, %172 : vector<2x128xf32>
    %c0_111 = arith.constant 0 : index
    %c12 = arith.constant 12 : index
    %c0_112 = arith.constant 0 : index
    %c0_113 = arith.constant 0 : index
    %174 = vector.load %arg2[%c0_111, %c12, %c0_112, %c0_113] : memref<1x16x2x128xf32, #tpu.memory_space<vmem>>, vector<1x1x2x128xf32>
    %175 = vector.shape_cast %174 : vector<1x1x2x128xf32> to vector<2x128xf32>
    %c0_114 = arith.constant 0 : index
    %c12_115 = arith.constant 12 : index
    %176 = memref.load %arg3[%c0_114, %c12_115] : memref<3x16xf32, #tpu.memory_space<smem>>
    %177 = vector.broadcast %176 : f32 to vector<2x128xf32>
    %178 = arith.mulf %177, %175 : vector<2x128xf32>
    %179 = arith.addf %165, %178 : vector<2x128xf32>
    %c1_116 = arith.constant 1 : index
    %c12_117 = arith.constant 12 : index
    %180 = memref.load %arg3[%c1_116, %c12_117] : memref<3x16xf32, #tpu.memory_space<smem>>
    %181 = vector.broadcast %180 : f32 to vector<2x128xf32>
    %182 = arith.mulf %181, %175 : vector<2x128xf32>
    %183 = arith.addf %169, %182 : vector<2x128xf32>
    %c2_118 = arith.constant 2 : index
    %c12_119 = arith.constant 12 : index
    %184 = memref.load %arg3[%c2_118, %c12_119] : memref<3x16xf32, #tpu.memory_space<smem>>
    %185 = vector.broadcast %184 : f32 to vector<2x128xf32>
    %186 = arith.mulf %185, %175 : vector<2x128xf32>
    %187 = arith.addf %173, %186 : vector<2x128xf32>
    %c0_120 = arith.constant 0 : index
    %c13 = arith.constant 13 : index
    %c0_121 = arith.constant 0 : index
    %c0_122 = arith.constant 0 : index
    %188 = vector.load %arg2[%c0_120, %c13, %c0_121, %c0_122] : memref<1x16x2x128xf32, #tpu.memory_space<vmem>>, vector<1x1x2x128xf32>
    %189 = vector.shape_cast %188 : vector<1x1x2x128xf32> to vector<2x128xf32>
    %c0_123 = arith.constant 0 : index
    %c13_124 = arith.constant 13 : index
    %190 = memref.load %arg3[%c0_123, %c13_124] : memref<3x16xf32, #tpu.memory_space<smem>>
    %191 = vector.broadcast %190 : f32 to vector<2x128xf32>
    %192 = arith.mulf %191, %189 : vector<2x128xf32>
    %193 = arith.addf %179, %192 : vector<2x128xf32>
    %c1_125 = arith.constant 1 : index
    %c13_126 = arith.constant 13 : index
    %194 = memref.load %arg3[%c1_125, %c13_126] : memref<3x16xf32, #tpu.memory_space<smem>>
    %195 = vector.broadcast %194 : f32 to vector<2x128xf32>
    %196 = arith.mulf %195, %189 : vector<2x128xf32>
    %197 = arith.addf %183, %196 : vector<2x128xf32>
    %c2_127 = arith.constant 2 : index
    %c13_128 = arith.constant 13 : index
    %198 = memref.load %arg3[%c2_127, %c13_128] : memref<3x16xf32, #tpu.memory_space<smem>>
    %199 = vector.broadcast %198 : f32 to vector<2x128xf32>
    %200 = arith.mulf %199, %189 : vector<2x128xf32>
    %201 = arith.addf %187, %200 : vector<2x128xf32>
    %c0_129 = arith.constant 0 : index
    %c14 = arith.constant 14 : index
    %c0_130 = arith.constant 0 : index
    %c0_131 = arith.constant 0 : index
    %202 = vector.load %arg2[%c0_129, %c14, %c0_130, %c0_131] : memref<1x16x2x128xf32, #tpu.memory_space<vmem>>, vector<1x1x2x128xf32>
    %203 = vector.shape_cast %202 : vector<1x1x2x128xf32> to vector<2x128xf32>
    %c0_132 = arith.constant 0 : index
    %c14_133 = arith.constant 14 : index
    %204 = memref.load %arg3[%c0_132, %c14_133] : memref<3x16xf32, #tpu.memory_space<smem>>
    %205 = vector.broadcast %204 : f32 to vector<2x128xf32>
    %206 = arith.mulf %205, %203 : vector<2x128xf32>
    %207 = arith.addf %193, %206 : vector<2x128xf32>
    %c1_134 = arith.constant 1 : index
    %c14_135 = arith.constant 14 : index
    %208 = memref.load %arg3[%c1_134, %c14_135] : memref<3x16xf32, #tpu.memory_space<smem>>
    %209 = vector.broadcast %208 : f32 to vector<2x128xf32>
    %210 = arith.mulf %209, %203 : vector<2x128xf32>
    %211 = arith.addf %197, %210 : vector<2x128xf32>
    %c2_136 = arith.constant 2 : index
    %c14_137 = arith.constant 14 : index
    %212 = memref.load %arg3[%c2_136, %c14_137] : memref<3x16xf32, #tpu.memory_space<smem>>
    %213 = vector.broadcast %212 : f32 to vector<2x128xf32>
    %214 = arith.mulf %213, %203 : vector<2x128xf32>
    %215 = arith.addf %201, %214 : vector<2x128xf32>
    %c0_138 = arith.constant 0 : index
    %c15 = arith.constant 15 : index
    %c0_139 = arith.constant 0 : index
    %c0_140 = arith.constant 0 : index
    %216 = vector.load %arg2[%c0_138, %c15, %c0_139, %c0_140] : memref<1x16x2x128xf32, #tpu.memory_space<vmem>>, vector<1x1x2x128xf32>
    %217 = vector.shape_cast %216 : vector<1x1x2x128xf32> to vector<2x128xf32>
    %c0_141 = arith.constant 0 : index
    %c15_142 = arith.constant 15 : index
    %218 = memref.load %arg3[%c0_141, %c15_142] : memref<3x16xf32, #tpu.memory_space<smem>>
    %219 = vector.broadcast %218 : f32 to vector<2x128xf32>
    %220 = arith.mulf %219, %217 : vector<2x128xf32>
    %221 = arith.addf %207, %220 : vector<2x128xf32>
    %c1_143 = arith.constant 1 : index
    %c15_144 = arith.constant 15 : index
    %222 = memref.load %arg3[%c1_143, %c15_144] : memref<3x16xf32, #tpu.memory_space<smem>>
    %223 = vector.broadcast %222 : f32 to vector<2x128xf32>
    %224 = arith.mulf %223, %217 : vector<2x128xf32>
    %225 = arith.addf %211, %224 : vector<2x128xf32>
    %c2_145 = arith.constant 2 : index
    %c15_146 = arith.constant 15 : index
    %226 = memref.load %arg3[%c2_145, %c15_146] : memref<3x16xf32, #tpu.memory_space<smem>>
    %227 = vector.broadcast %226 : f32 to vector<2x128xf32>
    %228 = arith.mulf %227, %217 : vector<2x128xf32>
    %229 = arith.addf %215, %228 : vector<2x128xf32>
    %c0_147 = arith.constant 0 : index
    %c0_148 = arith.constant 0 : index
    %c0_149 = arith.constant 0 : index
    %c0_150 = arith.constant 0 : index
    %230 = vector.load %arg5[%c0_147, %c0_148, %c0_149, %c0_150] : memref<1x3x2x128xf32, #tpu.memory_space<vmem>>, vector<1x1x2x128xf32>
    %231 = vector.shape_cast %230 : vector<1x1x2x128xf32> to vector<2x128xf32>
    %232 = vector.shape_cast %221 : vector<2x128xf32> to vector<1x1x2x128xf32>
    tpu.vector_store %arg5[%c0_147, %c0_148, %c0_149, %c0_150], %232 {strides = array<i32>} : memref<1x3x2x128xf32, #tpu.memory_space<vmem>>, vector<1x1x2x128xf32>,
    %c0_151 = arith.constant 0 : index
    %c1_152 = arith.constant 1 : index
    %c0_153 = arith.constant 0 : index
    %c0_154 = arith.constant 0 : index
    %233 = vector.load %arg5[%c0_151, %c1_152, %c0_153, %c0_154] : memref<1x3x2x128xf32, #tpu.memory_space<vmem>>, vector<1x1x2x128xf32>
    %234 = vector.shape_cast %233 : vector<1x1x2x128xf32> to vector<2x128xf32>
    %235 = vector.shape_cast %225 : vector<2x128xf32> to vector<1x1x2x128xf32>
    tpu.vector_store %arg5[%c0_151, %c1_152, %c0_153, %c0_154], %235 {strides = array<i32>} : memref<1x3x2x128xf32, #tpu.memory_space<vmem>>, vector<1x1x2x128xf32>,
    %c0_155 = arith.constant 0 : index
    %c2_156 = arith.constant 2 : index
    %c0_157 = arith.constant 0 : index
    %c0_158 = arith.constant 0 : index
    %236 = vector.load %arg5[%c0_155, %c2_156, %c0_157, %c0_158] : memref<1x3x2x128xf32, #tpu.memory_space<vmem>>, vector<1x1x2x128xf32>
    %237 = vector.shape_cast %236 : vector<1x1x2x128xf32> to vector<2x128xf32>
    %238 = vector.shape_cast %229 : vector<2x128xf32> to vector<1x1x2x128xf32>
    tpu.vector_store %arg5[%c0_155, %c2_156, %c0_157, %c0_158], %238 {strides = array<i32>} : memref<1x3x2x128xf32, #tpu.memory_space<vmem>>, vector<1x1x2x128xf32>,
    return
  }
  func.func @transform_0(%arg0: i32, %arg1: i32) -> (i32, i32, i32, i32) {
    %c0_i32 = arith.constant 0 : i32
    %c0_i32_0 = arith.constant 0 : i32
    %c0_i32_1 = arith.constant 0 : i32
    return %arg0, %c0_i32, %arg1, %c0_i32_0 : i32, i32, i32, i32
  }
  func.func @transform_1(%arg0: i32, %arg1: i32) -> (i32, i32) {
    %c0_i32 = arith.constant 0 : i32
    %c0_i32_0 = arith.constant 0 : i32
    %c0_i32_1 = arith.constant 0 : i32
    return %c0_i32, %c0_i32_0 : i32, i32
  }
  func.func @transform_2(%arg0: i32, %arg1: i32) -> i32 {
    %c0_i32 = arith.constant 0 : i32
    %c0_i32_0 = arith.constant 0 : i32
    return %c0_i32 : i32
  }
  func.func @transform_3(%arg0: i32, %arg1: i32) -> (i32, i32, i32, i32) {
    %c0_i32 = arith.constant 0 : i32
    %c0_i32_0 = arith.constant 0 : i32
    %c0_i32_1 = arith.constant 0 : i32
    return %arg0, %c0_i32, %arg1, %c0_i32_0 : i32, i32, i32, i32
  }
}

</mosaic_0001>

<bundles_post_ra>
// kernel: tpu_custom_call.1
= control target key start
LH: loop header
LB: loop body
LE: loop exit
PB: predicated region body
PF: predicated region fallthrough
CT: control target
= control target key end

     0   :  { %s1307_s0 = inlined_call_operand.hbm [shape: f32[2,16,2,128], index: 0, kind: input, shape index: {}]   ;;  %s1308_s1 = inlined_call_operand.hbm [shape: f32[3,16], index: 1, kind: input, shape index: {}]   ;;  %s1309_s2 = inlined_call_operand.vmem [shape: f32[3], index: 2, kind: input, shape index: {}]   ;;  %s1310_s3 = inlined_call_operand.hbm [shape: f32[2,3,2,128], index: 3, kind: output, shape index: {}]  }
   0x1   :  { %1311 = sst [smem:[#allocation14_spill]] %s1308_s1 }
   0x2   :  { %8 = vsyncpa [#allocation3], 0 }
   0x3   :  { %10 = vsyncpa [#allocation3 + $0x1], 0 }
   0x4   :  { %11 = vsyncpa [#allocation5], 0 }
   0x5   :  { %12 = vsyncpa [#allocation6], 0 }
   0x6   :  { %13 = vsyncpa [#allocation4], 0 }
   0x7   :  { %15 = vsyncpa [#allocation4 + $0x1], 0  ;;  %s945_s12 = smov 0   ;;  %s947_s13 = smov 0  }
   0x8   :  { %s949_s14 = smov 0   ;;  %s951_s15 = smov 0  }
   0x9   :  { %s953_s16 = smov 0   ;;  %s955_s17 = smov 0  }
   0xa LB: > { %s595_s18 = sadd.s32 4294967295, %s917_s17   ;;  %s596_s19 = sadd.s32 4294967294, %s917_s17   ;;  %s917_s17 = sphi %s955_s17, %s21_s17   ;;  %s913_s16 = sphi %s953_s16, %s1324_s16   ;;  %s909_s15 = sphi %s951_s15, %s1323_s15   ;;  %s905_s14 = sphi %s949_s14, %s1322_s14   ;;  %s901_s13 = sphi %s947_s13, %s1321_s13   ;;  %s897_s12 = sphi %s945_s12, %s1320_s12  }
   0xb   : > { %s42_s20 = sadd.s32 1, %s905_s14  ;;  %p49_p0 = scmp.ne.s32.totalorder %s905_s14, %s901_s13 }
   0xc   : > { %p50_p1 = scmp.eq.s32.totalorder %s917_s17, 0  ;;  %p55_p2 = scmp.ne.s32.totalorder %s901_s13, %s897_s12 }
   0xd   : > { %p983_p3 = scmp.eq.s32.totalorder %s595_s18, 0  ;;  %p123_p4 = scmp.eq.s32.totalorder %s595_s18, 1 }
   0xe   : > { %p987_p5 = por %p50_p1, %p49_p0  ;;  %p129_p6 = scmp.eq.s32.totalorder %s596_s19, 1 }
   0xf   : > { %p993_p7 = por %p983_p3, %p55_p2  ;;  %p997_p8 = por %p123_p4, %p49_p0 }
  0x10   : > { %p1001_p9 = por %p129_p6, %p55_p2  ;;  %p597_p10 = scmp.ge.s32.totalorder %s917_s17, 1 }
  0x11   : > { %p136_p11 = scmp.lt.s32.totalorder %s917_s17, 3  ;;  %s1317_s1 = sld [smem:[#allocation14_spill]] }
  0x12   : > { %p600_p13 = scmp.ge.s32.totalorder %s917_s17, 2  ;;  %p709_p0 = scmp.lt.s32.totalorder %s917_s17, 2 }
  0x13   : > { %p1010_p12 = pnand %p597_p10, %p136_p11  ;;  %s158_s5 = sshll.u32 %s1309_s2, 4  ;;  %s159_s5 = int_to_ptr.vmem [resolvable:$true] %s158_s5 }
  0x14   : > { %p1023_p2 = pnand %p709_p0, %p987_p5  ;;  %s919_s7 = smov [#allocation7]  }
  0x15   : > { %p692_p1 = pneg %p1010_p12  ;;  %s920_s8 = smov [#allocation8]  }
  0x16   : > { %s33_s9 = sadd.s32 1, %s913_s16  ;;  %s169_s10 = sand.u32 1, %s905_s14  }
  0x17   : > { %s148_s28 = sshll.u32 %s1317_s1, 4  ;;  %p693_p4 = pnand %p692_p1, %p983_p3  ;;  %s149_s28 = int_to_ptr.hbm [resolvable:$true] %s148_s28 }
  0x18   : > { %p35_p6 = scmp.ge.s32.totalorder %s33_s9, 2  ;;  %s601_s11 = sshll.u32 %s169_s10, 5 }
  0x19   : > { %695 = dma.hbm_to_smem (!%p693_p4), %s149_s28, 64, %s919_s7, [#allocation5]  }
  0x1a   : > { %698 = dma.vmem_to_smem (!%p693_p4), %s159_s5, 16, %s920_s8, [#allocation6]  }
  0x1b   : > { %s677_s18 = sshll.u32 %s913_s16, 5  ;;  %s1326_s9 = smov (%p35_p6, %s33_s9), 0 }
  0x1c   : > { %s179_s26 = scalar_lea.hbm %s1307_s0, %s677_s18  ;;  %s37_s27 = ssub.s32 %s913_s16, %s1326_s9 }
  0x1d   : > { %s180_s30 = sshll.u32 %s179_s26, 4  ;;  %p40_p5 = scmp.eq.s32.totalorder %s37_s27, 0  ;;  %s181_s30 = int_to_ptr.hbm [resolvable:$true] %s180_s30 }
  0x1e   : > { %s173_s28 = scalar_lea.vmem [#allocation2], %s601_s11  ;;  %s170_s7 = scalar_lea.sflag [#allocation3], %s169_s10 }
  0x1f   : > { %s182_s4 = sshll.u32 %s173_s28, 4  ;;  %s921_s8 = smov 32   ;;  %s183_s4 = int_to_ptr.vmem [resolvable:$true] %s182_s4 }
  0x20   : > { %s1042_s5 = scalar_select %p40_p5, %s905_s14, %s42_s20  }
  0x21   : > { %s922_s1 = smov 2   ;;  %194 = sbr.rel (%p1010_p12) target bundleno = 124 (0x7c), region = 32 }
  0x22   : > { %702 = dma.hbm_to_vmem [thread:$0]  (!%p1023_p2), %s181_s30, 512, %s183_s4, %s170_s7, %s921_s8, %s921_s8, %s922_s1  }
  0x23   : > { %s1049_s18 = sand.u32 (!%p1010_p12), 1, %s901_s13  }
  0x24   : > { %s605_s11 = sshll.u32 (!%p1010_p12), %s1049_s18, 5  ;;  %s197_s19 = scalar_lea.sflag (!%p1010_p12), [#allocation3], %s1049_s18 }
  0x25   : > { %s1053_s22 = scalar_lea.vmem (!%p1010_p12), [#allocation2], %s605_s11 }
  0x26   : > { %880 = dma.done.wait (%p993_p7), %s197_s19, 512  }
  0x27   : > { %882 = vsyncadd (%p993_p7), %s197_s19, 4294966784 }
  0x28   : > { %884 = dma.done.wait (%p983_p3), [#allocation5], 64  }
  0x29   : > { %886 = vsyncadd (%p983_p3), [#allocation5], 4294967232 }
  0x2a   : > { %888 = dma.done.wait (%p983_p3), [#allocation6], 16  }
  0x2b   : > { %890 = vsyncadd (%p983_p3), [#allocation6], 4294967280 }
  0x2c   : > { %216 = sfence }
  0x2d   : > { %s235_s1 = sld [smem:[#allocation8]]  ;;  %v1068_v0 = vld [vmem:[%s1053_s22] sm:$0x3]  ;;  %v1071_v1 = vld [vmem:[%s1053_s22 + $0x2] sm:$0x3] }
  0x2e   : > { %s242_s20 = sld [smem:[#allocation7]]  ;;  %v1076_v4 = vld [vmem:[%s1053_s22 + $0x4] sm:$0x3]  ;;  %v1083_v9 = vld [vmem:[%s1053_s22 + $0x6] sm:$0x3] }
  0x2f   : > { %s613_s23 = sld [smem:[#allocation7 + $0x1]]  ;;  %v1091_v13 = vld [vmem:[%s1053_s22 + $0x8] sm:$0x3]  ;;  %v1099_v17 = vld [vmem:[%s1053_s22 + $0xa] sm:$0x3] }
  0x30   : > { %s617_s29 = sld [smem:[#allocation7 + $0x2]]  ;;  %v1108_v21 = vld [vmem:[%s1053_s22 + $0xc] sm:$0x3]  ;;  %v1117_v25 = vld [vmem:[%s1053_s22 + $0xe] sm:$0x3] }
  0x31   : > { %s621_s6 = sld [smem:[#allocation7 + $0x3]]  ;;  %v1124_v29 = vld [vmem:[%s1053_s22 + $0x10] sm:$0x3]  ;;  %v1129_v33 = vld [vmem:[%s1053_s22 + $0x12] sm:$0x3] }
  0x32   : > { %s625_s10 = sld [smem:[#allocation7 + $0x4]]  ;;  %v1138_v37 = vld [vmem:[%s1053_s22 + $0x14] sm:$0x3]  ;;  %v1148_v43 = vld [vmem:[%s1053_s22 + $0x16] sm:$0x3] }
  0x33   : > { %s1073_s26 = sld [smem:[#allocation7 + $0x5]]  ;;  %v236_v2 = vstv %s235_s1  ;;  %v1159_v51 = vld [vmem:[%s1053_s22 + $0x18] sm:$0x3]  ;;  %v1171_v59 = vld [vmem:[%s1053_s22 + $0x1a] sm:$0x3] }
  0x34   : > { %v243_v3 = vstv %s242_s20  ;;  %s1078_s21 = sld [smem:[#allocation7 + $0x6]] }
  0x35   : > { %v244_v5 = vmul.f32 %v243_v3, %v1068_v0  ;;  %v257_v6 = vstv %s613_s23  ;;  %s1085_s27 = sld [smem:[#allocation7 + $0x7]] }
  0x36   : > { %v258_v7 = vmul.f32 %v1071_v1, %v257_v6  ;;  %v271_v8 = vstv %s617_s29  ;;  %s1088_s30 = sld [smem:[#allocation7 + $0x8]] }
  0x37   : > { %v245_v10 = vadd.f32 %v244_v5, %v236_v2  ;;  %v272_v11 = vmul.f32 %v1076_v4, %v271_v8  ;;  %v285_v12 = vstv %s621_s6  ;;  %s1093_s28 = sld [smem:[#allocation7 + $0x9]]  ;;  %v1182_v5 = vld [vmem:[%s1053_s22 + $0x1c] sm:$0x3] }
  0x38   : > { %v299_v14 = vstv %s625_s10  ;;  %v286_v16 = vmul.f32 %v1083_v9, %v285_v12  ;;  %s1096_s4 = sld [smem:[#allocation7 + $0xa]] }
  0x39   : > { %v259_v15 = vadd.f32 %v258_v7, %v245_v10  ;;  %v313_v18 = vstv %s1073_s26  ;;  %s1102_s7 = sld [smem:[#allocation7 + $0xb]]  ;;  %v300_v20 = vmul.f32 %v1091_v13, %v299_v14  ;;  %v1193_v14 = vld [vmem:[%s1053_s22 + $0x1e] sm:$0x3] }
  0x3a   : > { %s1105_s8 = sld [smem:[#allocation7 + $0xc]]  ;;  %v327_v22 = vstv %s1078_s21  ;;  %v314_v24 = vmul.f32 %v1099_v17, %v313_v18 }
  0x3b   : > { %v273_v19 = vadd.f32 %v272_v11, %v259_v15  ;;  %s1111_s11 = sld [smem:[#allocation7 + $0xd]]  ;;  %v341_v26 = vstv %s1085_s27  ;;  %v328_v28 = vmul.f32 %v1108_v21, %v327_v22 }
  0x3c   : > { %s1114_s19 = sld [smem:[#allocation7 + $0xe]]  ;;  %v355_v30 = vstv %s1088_s30  ;;  %v342_v32 = vmul.f32 %v1117_v25, %v341_v26 }
  0x3d   : > { %v287_v23 = vadd.f32 %v286_v16, %v273_v19  ;;  %s1120_s1 = sld [smem:[#allocation8 + $0x1]]  ;;  %v369_v34 = vstv %s1093_s28  ;;  %v356_v36 = vmul.f32 %v1124_v29, %v355_v30 }
  0x3e   : > { %s610_s20 = sld [smem:[#allocation7 + $0x80]]  ;;  %v383_v38 = vstv %s1096_s4  ;;  %v370_v40 = vmul.f32 %v1129_v33, %v369_v34 }
  0x3f   : > { %v301_v27 = vadd.f32 %v300_v20, %v287_v23  ;;  %s614_s23 = sld [smem:[#allocation7 + $0x81]]  ;;  %v397_v44 = vstv %s1102_s7  ;;  %v384_v48 = vmul.f32 %v1138_v37, %v383_v38 }
  0x40   : > { %s618_s29 = sld [smem:[#allocation7 + $0x82]]  ;;  %v411_v52 = vstv %s1105_s8  ;;  %v398_v57 = vmul.f32 %v1148_v43, %v397_v44 }
  0x41   : > { %v315_v31 = vadd.f32 %v314_v24, %v301_v27  ;;  %s1132_s6 = sld [smem:[#allocation7 + $0x83]]  ;;  %v425_v60 = vstv %s1111_s11  ;;  %v412_v2 = vmul.f32 %v1159_v51, %v411_v52 }
  0x42   : > { %s1135_s10 = sld [smem:[#allocation7 + $0x84]]  ;;  %v439_v6 = vstv %s1114_s19  ;;  %v426_v11 = vmul.f32 %v1171_v59, %v425_v60 }
  0x43   : > { %v329_v35 = vadd.f32 %v328_v28, %v315_v31  ;;  %s1141_s26 = sld [smem:[#allocation7 + $0x85]]  ;;  %v238_v41 = vstv %s1120_s1  ;;  %v440_v20 = vmul.f32 %v1182_v5, %v439_v6 }
  0x44   : > { %v247_v42 = vstv %s610_s20  ;;  %s1145_s21 = sld [smem:[#allocation7 + $0x86]] }
  0x45   : > { %v343_v39 = vadd.f32 %v342_v32, %v329_v35  ;;  %s1151_s27 = sld [smem:[#allocation7 + $0xf]]  ;;  %v248_v45 = vmul.f32 %v247_v42, %v1068_v0  ;;  %v261_v46 = vstv %s614_s23  ;;  %s678_s23 = smul.u32 6, %s1049_s18 }
  0x46   : > { %v262_v49 = vmul.f32 %v1071_v1, %v261_v46  ;;  %v275_v50 = vstv %s618_s29  ;;  %s1156_s30 = sld [smem:[#allocation7 + $0x87]] }
  0x47   : > { %v357_v47 = vadd.f32 %v356_v36, %v343_v39  ;;  %v249_v53 = vadd.f32 %v248_v45, %v238_v41  ;;  %v276_v54 = vmul.f32 %v1076_v4, %v275_v50  ;;  %v289_v55 = vstv %s1132_s6  ;;  %s1164_s28 = sld [smem:[#allocation7 + $0x88]] }
  0x48   : > { %v303_v58 = vstv %s1135_s10  ;;  %s1168_s4 = sld [smem:[#allocation7 + $0x89]]  ;;  %v290_v62 = vmul.f32 %v1083_v9, %v289_v55 }
  0x49   : > { %v371_v56 = vadd.f32 %v370_v40, %v357_v47  ;;  %v263_v61 = vadd.f32 %v262_v49, %v249_v53  ;;  %s1175_s7 = sld [smem:[#allocation7 + $0x8a]]  ;;  %v317_v3 = vstv %s1141_s26  ;;  %v304_v8 = vmul.f32 %v1091_v13, %v303_v58 }
  0x4a   : > { %s1179_s8 = sld [smem:[#allocation7 + $0x8b]]  ;;  %v331_v12 = vstv %s1145_s21  ;;  %v318_v18 = vmul.f32 %v1099_v17, %v317_v3 }
  0x4b   : > { %v385_v63 = vadd.f32 %v384_v48, %v371_v56  ;;  %v277_v7 = vadd.f32 %v276_v54, %v263_v61  ;;  %s1186_s11 = sld [smem:[#allocation7 + $0x8c]]  ;;  %v453_v15 = vstv %s1151_s27  ;;  %v332_v24 = vmul.f32 %v1108_v21, %v331_v12 }
  0x4c   : > { %s1190_s1 = sld [smem:[#allocation7 + $0x8d]]  ;;  %v345_v22 = vstv %s1156_s30  ;;  %v454_v27 = vmul.f32 %v1193_v14, %v453_v15  ;;  %s1221_s30 = scalar_lea.vmem [#allocation9], %s678_s23 }
  0x4d   : > { %v399_v10 = vadd.f32 %v398_v57, %v385_v63  ;;  %v291_v16 = vadd.f32 %v290_v62, %v277_v7  ;;  %s1197_s19 = sld [smem:[#allocation7 + $0x8e]]  ;;  %v359_v28 = vstv %s1164_s28  ;;  %v346_v31 = vmul.f32 %v1117_v25, %v345_v22 }
  0x4e   : > { %s1201_s20 = sld [smem:[#allocation8 + $0x2]]  ;;  %v373_v34 = vstv %s1168_s4  ;;  %v360_v36 = vmul.f32 %v1124_v29, %v359_v28 }
  0x4f   : > { %v413_v19 = vadd.f32 %v412_v2, %v399_v10  ;;  %v305_v23 = vadd.f32 %v304_v8, %v291_v16  ;;  %s611_s22 = sld [smem:[#allocation7 + $0x100]]  ;;  %v387_v39 = vstv %s1175_s7  ;;  %v374_v41 = vmul.f32 %v1129_v33, %v373_v34 }
  0x50   : > { %s615_s29 = sld [smem:[#allocation7 + $0x101]]  ;;  %v401_v45 = vstv %s1179_s8  ;;  %v388_v49 = vmul.f32 %v1138_v37, %v387_v39 }
  0x51   : > { %v427_v26 = vadd.f32 %v426_v11, %v413_v19  ;;  %v319_v30 = vadd.f32 %v318_v18, %v305_v23  ;;  %s619_s6 = sld [smem:[#allocation7 + $0x102]]  ;;  %v415_v53 = vstv %s1186_s11 }
  0x52   : > { %s1209_s10 = sld [smem:[#allocation7 + $0x103]]  ;;  %v429_v60 = vstv %s1190_s1  ;;  %v416_v63 = vmul.f32 %v1159_v51, %v415_v53 }
  0x53   : > { %v441_v32 = vadd.f32 %v440_v20, %v427_v26  ;;  %v333_v35 = vadd.f32 %v332_v24, %v319_v30  ;;  %s1212_s26 = sld [smem:[#allocation7 + $0x104]]  ;;  %v430_v8 = vmul.f32 %v1171_v59, %v429_v60 }
  0x54   : > { %s1215_s21 = sld [smem:[#allocation7 + $0x105]]  ;;  %v240_v42 = vstv %s1201_s20 }
  0x55   : > { %v455_v38 = vadd.f32 %v454_v27, %v441_v32  ;;  %v347_v40 = vadd.f32 %v346_v31, %v333_v35  ;;  %v251_v44 = vstv %s611_s22  ;;  %s1219_s27 = sld [smem:[#allocation7 + $0x106]] }
  0x56   : > { %s1225_s28 = sld [smem:[#allocation7 + $0x8f]]  ;;  %v252_v46 = vmul.f32 %v251_v44, %v1068_v0  ;;  %v265_v47 = vstv %s615_s29  ;;  %v402_v0 = vmul.f32 %v1148_v43, %v401_v45  ;;  %s679_s29 = smul.u32 6, %s909_s15 }
  0x57   : > { %464 = vst [vmem:[%s1221_s30] sm:$0x3] %v455_v38  ;;  %v361_v48 = vadd.f32 %v360_v36, %v347_v40  ;;  %v266_v50 = vmul.f32 %v1071_v1, %v265_v47  ;;  %v279_v52 = vstv %s619_s6  ;;  %s1230_s4 = sld [smem:[#allocation7 + $0x107]] }
  0x58   : > { %v253_v54 = vadd.f32 %v252_v46, %v240_v42  ;;  %v280_v55 = vmul.f32 %v1076_v4, %v279_v52  ;;  %v293_v56 = vstv %s1209_s10  ;;  %s1237_s7 = sld [smem:[#allocation7 + $0x108]]  ;;  %v443_v4 = vstv %s1197_s19 }
  0x59   : > { %v375_v57 = vadd.f32 %v374_v41, %v361_v48  ;;  %v307_v58 = vstv %s1212_s26  ;;  %v294_v61 = vmul.f32 %v1083_v9, %v293_v56  ;;  %s1243_s8 = sld [smem:[#allocation7 + $0x109]]  ;;  %v444_v16 = vmul.f32 %v1182_v5, %v443_v4  ;;  %s482_s26 = scalar_lea.hbm %s1310_s3, %s679_s29 }
  0x5a   : > { %v267_v1 = vadd.f32 %v266_v50, %v253_v54  ;;  %v321_v2 = vstv %s1215_s21  ;;  %v308_v6 = vmul.f32 %v1091_v13, %v307_v58  ;;  %s651_s11 = sld [smem:[#allocation7 + $0x10a]]  ;;  %s483_s21 = sshll.u32 %s1221_s30, 4  ;;  %s484_s21 = int_to_ptr.vmem [resolvable:$true] %s483_s21 }
  0x5b   : > { %v389_v62 = vadd.f32 %v388_v49, %v375_v57  ;;  %v335_v10 = vstv %s1219_s27  ;;  %v322_v12 = vmul.f32 %v1099_v17, %v321_v2  ;;  %s655_s1 = sld [smem:[#allocation7 + $0x10b]]  ;;  %s485_s15 = sshll.u32 %s482_s26, 4  ;;  %s486_s15 = int_to_ptr.hbm [resolvable:$true] %s485_s15 }
  0x5c   : > { %v281_v3 = vadd.f32 %v280_v55, %v267_v1  ;;  %v457_v11 = vstv %s1225_s28  ;;  %v336_v20 = vmul.f32 %v1108_v21, %v335_v10  ;;  %s659_s19 = sld [smem:[#allocation7 + $0x10c]]  ;;  %s470_s27 = scalar_lea.sflag [#allocation4], %s1049_s18 }
  0x5d   : > { %v403_v7 = vadd.f32 %v402_v0, %v389_v62  ;;  %v349_v18 = vstv %s1230_s4  ;;  %v458_v22 = vmul.f32 %v1193_v14, %v457_v11  ;;  %s663_s20 = sld [smem:[#allocation7 + $0x10d]]  ;;  %s841_s28 = sshra.s32 %s486_s15, 4  ;;  %s842_s28 = int_to_ptr.hbm [resolvable:$true] %s841_s28 }
  0x5e   : > { %v295_v9 = vadd.f32 %v294_v61, %v281_v3  ;;  %v363_v23 = vstv %s1237_s7  ;;  %v350_v26 = vmul.f32 %v1117_v25, %v349_v18  ;;  %s667_s23 = sld [smem:[#allocation7 + $0x10e]]  ;;  %s843_s4 = scalar_lea.hbm %s842_s28, 6 }
  0x5f   : > { %v417_v15 = vadd.f32 %v416_v63, %v403_v7  ;;  %v377_v28 = vstv %s1243_s8  ;;  %v364_v30 = vmul.f32 %v1124_v29, %v363_v23  ;;  %s671_s22 = sld [smem:[#allocation7 + $0x10f]]  ;;  %p844_p3 = scmp.ne.s32.totalorder %s842_s28, %s843_s4 }
  0x60   : > { %v309_v19 = vadd.f32 %v308_v6, %v295_v9  ;;  %v391_v32 = vstv %s651_s11  ;;  %v378_v34 = vmul.f32 %v1129_v33, %v377_v28  ;;  %s847_s11 = scalar_lea.hbm %s1310_s3, 12  ;;  %p848_p11 = scmp.lt.s32.totalorder %s842_s28, %s1310_s3 }
  0x61   : > { %v431_v13 = vadd.f32 %v430_v8, %v417_v15  ;;  %v405_v35 = vstv %s655_s1  ;;  %v392_v25 = vmul.f32 %v1138_v37, %v391_v32  ;;  %p845_p7 = pnand %p844_p3, %p997_p8  ;;  %p849_p12 = scmp.lt.s32.totalorder %s847_s11, %s843_s4 }
  0x62   : > { %v323_v24 = vadd.f32 %v322_v12, %v309_v19  ;;  %v419_v38 = vstv %s659_s19  ;;  %v406_v40 = vmul.f32 %v1148_v43, %v405_v35 }
  0x63   : > { %v445_v27 = vadd.f32 %v444_v16, %v431_v13  ;;  %v433_v41 = vstv %s663_s20  ;;  %v420_v42 = vmul.f32 %v1159_v51, %v419_v38  ;;  %p846_p10 = pneg %p845_p7  ;;  %p850_p0 = por %p849_p12, %p848_p11 }
  0x64   : > { %v337_v17 = vadd.f32 %v336_v20, %v323_v24  ;;  %v447_v44 = vstv %s667_s23  ;;  %v434_v45 = vmul.f32 %v1171_v59, %v433_v41 }
  0x65   : > { %v459_v31 = vadd.f32 %v458_v22, %v445_v27  ;;  %v461_v46 = vstv %s671_s22  ;;  %v448_v48 = vmul.f32 %v1182_v5, %v447_v44  ;;  %p851_p1 = pnand %p850_p0, %p846_p10 }
  0x66   : > { %v351_v21 = vadd.f32 %v350_v26, %v337_v17  ;;  %v462_v43 = vmul.f32 %v1193_v14, %v461_v46 }
  0x67   : > { %672 = vst [vmem:[%s1221_s30 + $0x2] sm:$0x3] %v459_v31 }
  0x68   : > { %v365_v36 = vadd.f32 %v364_v30, %v351_v21 }
  0x6a   : > { %v379_v39 = vadd.f32 %v378_v34, %v365_v36 }
  0x6c   : > { %v393_v29 = vadd.f32 %v392_v25, %v379_v39 }
  0x6e   : > { %v407_v33 = vadd.f32 %v406_v40, %v393_v29 }
  0x70   : > { %v421_v47 = vadd.f32 %v420_v42, %v407_v33 }
  0x72   : > { %v435_v37 = vadd.f32 %v434_v45, %v421_v47 }
  0x74   : > { %v449_v51 = vadd.f32 %v448_v48, %v435_v37 }
  0x76   : > { %v463_v49 = vadd.f32 %v462_v43, %v449_v51 }
  0x78   : > { %673 = vst [vmem:[%s1221_s30 + $0x4] sm:$0x3] %v463_v49 }
  0x79   : > { %854 = shalt.err (!%p851_p1)
}
  0x7a   : > { %s923_s18 = smov 32   ;;  %s924_s30 = smov 2  }
  0x7b   : > { %690 = dma.vmem_to_hbm [thread:$0]  (%p997_p8), %s484_s21, 96, %s486_s15, %s470_s27, %s923_s18, %s923_s18, %s924_s30  }
  0x7c PF: > { %s500_s20 = sand.u32 1, %s897_s12   ;;  %p704_p2 = pnand %p600_p13, %p1001_p9 }
  0x7d   : > { %s501_s23 = scalar_lea.sflag [#allocation4], %s500_s20 }
  0x7e   : > { %p705_p4 = pneg %p704_p2 }
  0x80   : > { %892 = dma.done.wait (%p705_p4), %s501_s23, 96  }
  0x81   : > { %894 = vsyncadd (%p705_p4), %s501_s23, 4294967200  ;;  %s21_s17 = sadd.s32 1, %s917_s17   ;;  %s1320_s12 = smov %s901_s13 }
  0x82   : > { %p18_p6 = scmp.ge.s32.totalorder %s21_s17, 4   ;;  %s1321_s13 = smov %s905_s14 }
  0x83   : > { %s1322_s14 = smov %s1042_s5  ;;  %s1323_s15 = smov %s913_s16 }
  0x84   : > { %s1324_s16 = smov %s1326_s9  ;;  %20 = sbr.rel (!%p18_p6) target bundleno = 10 (0xa), region = 104 }
  0x89   :  { %507 = vsyncpa [#allocation3], 1 }
  0x8a   :  { %509 = vsyncpa [#allocation3 + $0x1], 1 }
  0x8b   :  { %510 = vsyncpa [#allocation4], 1 }
  0x8c   :  { %512 = vsyncpa [#allocation4 + $0x1], 1 }
  0x8d   :  { %513 = vsyncpa [#allocation5], 1 }
  0x8e   :  { %515 = vsyncpa [#allocation5 + $0x1], 1 }
  0x8f   :  { %516 = vsyncpa [#allocation6], 1 }
  0x90   :  { %518 = vsyncpa [#allocation6 + $0x1], 1 }

</bundles_post_ra>
